<compile_context>
chip_gen: v6e
topology: v6e:2x2x1
jax: 0.10.0
libtpu: 0.0.40
codegen_flags: <defaults>
</compile_context>

<pallas_src>
import functools

import jax
import jax.numpy as jnp
from jax.experimental import pallas as pl
from jax.experimental.pallas import tpu as pltpu

_MiB = 1 << 20


def _mxu_dot(a, b, compute_dtype):
    # a @ b on the MXU with f32 accumulation.  compute_dtype=bf16 uses the fast
    # MXU path (v6e/v7x 2x256x256, v5e 128x128) and halves operand bytes.
    return jnp.dot(a.astype(compute_dtype), b.astype(compute_dtype),
                   preferred_element_type=jnp.float32)


# --------------------------- tile-size planning -------------------------------

def _valid_tiles(total, multiple, cap=1024):
    """Tile sizes that divide `total` and are (8,128)-legal for that axis:
    t % multiple == 0, or t == total (full dim).  Sorted descending."""
    cands = {total}
    for t in range(multiple, min(total, cap) + 1, multiple):
        if total % t == 0:
            cands.add(t)
    return sorted(cands, reverse=True)


def _vmem_limit(est_bytes):
    """Explicit scoped-VMEM limit: actual per-step bytes x2 headroom, clipped so
    it stays legal on every generation (v7x physical VMEM is 64 MiB)."""
    return int(min(64 * _MiB, max(32 * _MiB, 2 * est_bytes)))


def _qkv_tile_plan(n, m_in, m_out, n_inputs, budget=18 * _MiB):
    """(row tile, output-column tile, per-step byte estimate) for kernel 1."""
    bn_list = [t for t in _valid_tiles(n, 8) if t <= 256] or [n]
    bm_list = [t for t in _valid_tiles(m_out, 128) if t <= 512] or [m_out]

    def est(bn, bm):   # f32 bytes, x2 double-buffering on every streamed block
        return 8 * (n_inputs * bn * m_in + 3 * m_in * bm + 3 * bn * bm + 3 * bm)

    best = None
    for bn in bn_list:
        for bm in bm_list:
            if est(bn, bm) <= budget and (best is None or (bn * bm, bm) > best[0]):
                best = ((bn * bm, bm), bn, bm)
    bn, bm = (best[1], best[2]) if best else (bn_list[-1], bm_list[-1])
    # v7x megacore: make sure the parallel grid has >= 2 steps when shapes allow.
    if n // bn == 1 and m_out // bm == 1:
        smaller = [t for t in bn_list if t < bn]
        if smaller:
            bn = smaller[0]
    return bn, bm, est(bn, bm)


def _attn_tile_plan(bh, s, d, budget=16 * _MiB):
    """(head-batch tile, query-row tile, byte estimate) for kernel 2."""
    tq_list = [t for t in _valid_tiles(s, 8) if t <= 256] or [s]
    bh_list = [t for t in _valid_tiles(bh, 1, cap=256) if t <= 64] or [bh]

    def est(bhb, tq):
        stream = 8 * bhb * (2 * tq * d + 2 * s * d + tq * s)   # q,ctx,k,v,attn x2
        temp = 12 * bhb * tq * s                               # scores/exp temps
        return stream + temp

    best = None
    for bhb in bh_list:
        for tq in tq_list:
            if est(bhb, tq) <= budget and (best is None or (bhb * tq, tq) > best[0]):
                best = ((bhb * tq, tq), bhb, tq)
    bhb, tq = (best[1], best[2]) if best else (bh_list[-1], tq_list[-1])
    if (bh // bhb) * (s // tq) == 1:        # give the second TC work on v7x
        smaller_bh = [t for t in bh_list if t < bhb]
        smaller_tq = [t for t in tq_list if t < tq]
        if smaller_bh:
            bhb = smaller_bh[0]
        elif smaller_tq:
            tq = smaller_tq[0]
    return bhb, tq, est(bhb, tq)


def _out_ln_tile_plan(n, m, budget=18 * _MiB):
    """(row tile, contraction tile, byte estimate) for kernel 3."""
    bn_list = [t for t in _valid_tiles(n, 8) if t <= 256] or [n]
    bk_list = [t for t in _valid_tiles(m, 128) if t <= 512] or [m]

    def est(bn, bk):
        return (8 * (bn * bk + bk * m + 2 * bn * m + 3 * m)    # streamed blocks x2
                + 4 * bn * m)                                  # f32 accumulator

    best = None
    for bn in bn_list:
        for bk in bk_list:
            if est(bn, bk) <= budget and (best is None or (bn * bk, bk) > best[0]):
                best = ((bn * bk, bk), bn, bk)
    bn, bk = (best[1], best[2]) if best else (bn_list[-1], bk_list[-1])
    if n // bn == 1:
        smaller = [t for t in bn_list if t < bn]
        if smaller:
            bn = smaller[0]
    return bn, bk, est(bn, bk)


# --------------------- kernel 1: fused Q/K/V projections ---------------------

def _qkv_proj_kernel(*refs, scale, compute_dtype, shared_kv):
    if shared_kv:
        (kvx_ref, qx_ref, wk_ref, wv_ref, wq_ref,
         bk_ref, bv_ref, bq_ref, k_ref, v_ref, q_ref) = refs
        kx = kvx_ref[...]
        vx = kx                       # self-attention: single shared input DMA
    else:
        (kx_ref, vx_ref, qx_ref, wk_ref, wv_ref, wq_ref,
         bk_ref, bv_ref, bq_ref, k_ref, v_ref, q_ref) = refs
        kx = kx_ref[...]
        vx = vx_ref[...]
    qx = qx_ref[...]
    # Weights arrive pre-transposed as (in, out): plain x @ W, no in-kernel .T.
    k_ref[...] = (_mxu_dot(kx, wk_ref[...], compute_dtype)
                  + bk_ref[...]).astype(k_ref.dtype)
    v_ref[...] = (_mxu_dot(vx, wv_ref[...], compute_dtype)
                  + bv_ref[...]).astype(v_ref.dtype)
    # Softmax scale folded into q (touches N*D once, not the S*S scores later).
    q_ref[...] = ((_mxu_dot(qx, wq_ref[...], compute_dtype) + bq_ref[...])
                  * scale).astype(q_ref.dtype)


def fused_qkv_projection(kx, vx, qx, wk_t, wv_t, wq_t, bk, bv, bq, scale, *,
                         shared_kv=False, compute_dtype=jnp.float32,
                         out_dtype=jnp.float32):
    n, m_in = qx.shape
    m_out = wq_t.shape[1]
    n_inputs = 2 if shared_kv else 3
    bn, bm, est = _qkv_tile_plan(n, m_in, m_out, n_inputs)
    grid = (n // bn, m_out // bm)

    x_spec = pl.BlockSpec((bn, m_in), lambda i, j: (i, 0))   # constant over j
    w_spec = pl.BlockSpec((m_in, bm), lambda i, j: (0, j))   # weight panels stream
    b_spec = pl.BlockSpec((1, bm), lambda i, j: (0, j))
    o_spec = pl.BlockSpec((bn, bm), lambda i, j: (i, j))
    out_sds = jax.ShapeDtypeStruct((n, m_out), out_dtype)

    x_inputs = (kx, qx) if shared_kv else (kx, vx, qx)
    return pl.pallas_call(
        functools.partial(_qkv_proj_kernel, scale=scale,
                          compute_dtype=compute_dtype, shared_kv=shared_kv),
        out_shape=(out_sds, out_sds, out_sds),
        grid=grid,
        in_specs=[x_spec] * n_inputs + [w_spec] * 3 + [b_spec] * 3,
        out_specs=(o_spec, o_spec, o_spec),
        compiler_params=pltpu.CompilerParams(
            dimension_semantics=("parallel", "parallel"),
            vmem_limit_bytes=_vmem_limit(est)),
    )(*x_inputs, wk_t, wv_t, wq_t,
      bk.reshape(1, m_out), bv.reshape(1, m_out), bq.reshape(1, m_out))


# ----------------- kernel 2: batched scaled-dot-product attn -----------------

def _attention_kernel(q_ref, k_ref, v_ref, ctx_ref, attn_ref, *, compute_dtype):
    q = q_ref[...].astype(compute_dtype)      # (bh_blk, tq, D); scale already in q
    k = k_ref[...].astype(compute_dtype)      # (bh_blk, S,  D)
    v = v_ref[...].astype(compute_dtype)
    # Batched dot_general contracting on D -> no materialized k transpose.
    scores = jnp.einsum("bqd,bkd->bqk", q, k, preferred_element_type=jnp.float32)
    m = jnp.max(scores, axis=-1, keepdims=True)
    e = jnp.exp(scores - m)
    l = jnp.sum(e, axis=-1, keepdims=True)
    attn = e * pl.reciprocal(l, approx=False)  # exact: attn is a module output
    attn_ref[...] = attn
    ctx_ref[...] = jnp.einsum("bqk,bkd->bqd", attn.astype(compute_dtype), v,
                              preferred_element_type=jnp.float32
                              ).astype(ctx_ref.dtype)


def batched_attention(q, k, v, *, compute_dtype=jnp.float32,
                      ctx_dtype=jnp.float32):
    bh, s, d = q.shape
    bh_blk, tq, est = _attn_tile_plan(bh, s, d)
    grid = (bh // bh_blk, s // tq)             # (head-batch tiles, query tiles)

    q_spec = pl.BlockSpec((bh_blk, tq, d), lambda i, j: (i, j, 0))
    kv_spec = pl.BlockSpec((bh_blk, s, d), lambda i, j: (i, 0, 0))  # reused over j
    ctx_spec = pl.BlockSpec((bh_blk, tq, d), lambda i, j: (i, j, 0))
    attn_spec = pl.BlockSpec((bh_blk, tq, s), lambda i, j: (i, j, 0))

    return pl.pallas_call(
        functools.partial(_attention_kernel, compute_dtype=compute_dtype),
        out_shape=(jax.ShapeDtypeStruct((bh, s, d), ctx_dtype),
                   jax.ShapeDtypeStruct((bh, s, s), jnp.float32)),
        grid=grid,
        in_specs=[q_spec, kv_spec, kv_spec],
        out_specs=(ctx_spec, attn_spec),
        compiler_params=pltpu.CompilerParams(
            dimension_semantics=("parallel", "parallel"),
            vmem_limit_bytes=_vmem_limit(est)),
    )(q, k, v)


# -------------- kernel 3: final linear + residual + LayerNorm ----------------

def _out_ln_kernel(ctx_ref, w_ref, b_ref, res_ref, g_ref, beta_ref, o_ref,
                   acc_ref, *, eps, compute_dtype):
    kk = pl.program_id(1)

    @pl.when(kk == 0)
    def _():
        acc_ref[...] = jnp.zeros_like(acc_ref)

    acc_ref[...] += _mxu_dot(ctx_ref[...], w_ref[...], compute_dtype)

    @pl.when(kk == pl.num_programs(1) - 1)
    def _():
        # dropout p=0.0 -> identity; residual add + LayerNorm (biased var, torch).
        y = acc_ref[...] + b_ref[...] + res_ref[...]
        mean = jnp.mean(y, axis=-1, keepdims=True)
        var = jnp.mean(jnp.square(y - mean), axis=-1, keepdims=True)
        o_ref[...] = (((y - mean) * jax.lax.rsqrt(var + eps)) * g_ref[...]
                      + beta_ref[...]).astype(o_ref.dtype)


def final_linear_layernorm(ctx2d, wf_t, bf, res2d, gamma, beta, *, eps=1e-5,
                           compute_dtype=jnp.float32):
    n, m = res2d.shape
    bn, bk, est = _out_ln_tile_plan(n, m)
    grid = (n // bn, m // bk)                  # reduction (k) axis last

    row_spec = pl.BlockSpec((bn, m), lambda i, k: (i, 0))
    vec_spec = pl.BlockSpec((1, m), lambda i, k: (0, 0))
    return pl.pallas_call(
        functools.partial(_out_ln_kernel, eps=eps, compute_dtype=compute_dtype),
        out_shape=jax.ShapeDtypeStruct((n, m), jnp.float32),
        grid=grid,
        in_specs=[pl.BlockSpec((bn, bk), lambda i, k: (i, k)),   # ctx panel
                  pl.BlockSpec((bk, m), lambda i, k: (k, 0)),    # weight streams
                  vec_spec, row_spec, vec_spec, vec_spec],
        out_specs=row_spec,
        scratch_shapes=[pltpu.VMEM((bn, m), jnp.float32)],
        compiler_params=pltpu.CompilerParams(
            dimension_semantics=("parallel", "arbitrary"),
            vmem_limit_bytes=_vmem_limit(est)),
    )(ctx2d, wf_t, bf.reshape(1, m), res2d,
      gamma.reshape(1, m), beta.reshape(1, m))


# ------------------------------ forward glue ---------------------------------

def multi_head_attention(params, key, value, query, num_heads, *,
                         compute_dtype=jnp.float32, kv_same=None):
    """Exact forward semantics of the PyTorch MultiHeadAttention (mask=None).

    kv_same=True asserts key and value are the same tensor (self-attention) so
    kernel 1 DMAs the shared input only once; under jit pass it explicitly.
    """
    b, s, m = query.shape
    h = num_heads
    d = m // h
    residual = query
    if kv_same is None:
        kv_same = key is value

    compute_dtype = jnp.dtype(compute_dtype)
    # bf16 compute also stores k/v/q/context intermediates in bf16 to halve the
    # inter-kernel HBM traffic; the f32 default keeps the module's exact math.
    inter_dtype = (jnp.float32 if compute_dtype == jnp.dtype(jnp.float32)
                   else jnp.bfloat16)

    # Pre-transpose (and pre-cast) PyTorch (out, in) weights once, wrapper-side,
    # so every kernel contracts on a plain (in, out) matrix with no XLU transpose.
    wk_t = params["wk"].T.astype(compute_dtype)
    wv_t = params["wv"].T.astype(compute_dtype)
    wq_t = params["wq"].T.astype(compute_dtype)
    wf_t = params["wf"].T.astype(compute_dtype)

    # PyTorch quirk kept verbatim: scale = (dim_per_head // num_heads) ** (-0.5).
    scale = float((d // h) ** (-0.5))

    k, v, q = fused_qkv_projection(
        key.reshape(b * s, m), value.reshape(b * s, m), query.reshape(b * s, m),
        wk_t, wv_t, wq_t, params["bk"], params["bv"], params["bq"], scale,
        shared_kv=kv_same, compute_dtype=compute_dtype, out_dtype=inter_dtype)

    # PyTorch `.view(batch*heads, -1, dim_per_head)` row-major reshape: free.
    q = q.reshape(b * h, s, d)
    k = k.reshape(b * h, s, d)
    v = v.reshape(b * h, s, d)

    context, attention = batched_attention(
        q, k, v, compute_dtype=compute_dtype, ctx_dtype=inter_dtype)

    ctx2d = context.reshape(b * s, m)          # `.view(batch, -1, H*d)`: free
    out = final_linear_layernorm(
        ctx2d, wf_t, params["bf"], residual.reshape(b * s, m),
        params["gamma"], params["beta"], compute_dtype=compute_dtype)
    return out.reshape(b, s, m), attention


# ------------------------------ pure-JAX ref ---------------------------------

def reference_mha(params, key, value, query, num_heads):
    b, s, m = query.shape
    h = num_heads
    d = m // h
    residual = query
    k = key.reshape(-1, m) @ params["wk"].T + params["bk"]
    v = value.reshape(-1, m) @ params["wv"].T + params["bv"]
    q = query.reshape(-1, m) @ params["wq"].T + params["bq"]
    k = k.reshape(b * h, s, d)
    v = v.reshape(b * h, s, d)
    q = q.reshape(b * h, s, d)
    scale = (d // h) ** (-0.5)
    scores = jnp.einsum("bqd,bkd->bqk", q, k) * scale
    attn = jax.nn.softmax(scores, axis=-1)
    ctx = jnp.einsum("bqk,bkd->bqd", attn, v).reshape(b, s, m)
    out = ctx.reshape(-1, m) @ params["wf"].T + params["bf"]
    y = residual.reshape(-1, m) + out
    mean = y.mean(-1, keepdims=True)
    var = ((y - mean) ** 2).mean(-1, keepdims=True)
    out = (y - mean) / jnp.sqrt(var + 1e-5) * params["gamma"] + params["beta"]
    return out.reshape(b, s, m), attn


# ---------------------------------- main --------------------------------------

if __name__ == "__main__":
    B, S, M, H = 2, 8, 32, 4   # model_dim=32, num_heads=4 -> dim_per_head=8
    keys = jax.random.split(jax.random.PRNGKey(0), 10)

    params = {
        "wk": jax.random.normal(keys[0], (M, M), jnp.float32) * 0.05,
        "bk": jax.random.normal(keys[1], (M,), jnp.float32) * 0.05,
        "wv": jax.random.normal(keys[2], (M, M), jnp.float32) * 0.05,
        "bv": jax.random.normal(keys[3], (M,), jnp.float32) * 0.05,
        "wq": jax.random.normal(keys[4], (M, M), jnp.float32) * 0.05,
        "bq": jax.random.normal(keys[5], (M,), jnp.float32) * 0.05,
        "wf": jax.random.normal(keys[6], (M, M), jnp.float32) * 0.05,
        "bf": jax.random.normal(keys[7], (M,), jnp.float32) * 0.05,
        "gamma": jnp.ones((M,), jnp.float32),   # LayerNorm default init
        "beta": jnp.zeros((M,), jnp.float32),
    }

    key_in = jax.random.normal(keys[8], (B, S, M), jnp.float32)
    value_in = key_in                      # typical self-attention usage
    query_in = jax.random.normal(keys[9], (B, S, M), jnp.float32)

    ref_out, ref_attn = reference_mha(params, key_in, value_in, query_in, H)

    # f32 path: exact module numerics.
    mha = jax.jit(functools.partial(multi_head_attention, num_heads=H,
                                    kv_same=True))
    out, attn = jax.block_until_ready(mha(params, key_in, value_in, query_in))
    assert out.shape == (B, S, M) and attn.shape == (B * H, S, S)
    assert jnp.allclose(out, ref_out, atol=2e-4, rtol=2e-4)
    assert jnp.allclose(attn, ref_attn, atol=2e-5, rtol=2e-5)

    # bf16 MXU path (v6e/v7x fast path): looser tolerance, same semantics.
    mha_bf16 = jax.jit(functools.partial(multi_head_attention, num_heads=H,
                                         kv_same=True,
                                         compute_dtype=jnp.bfloat16))
    out_bf, attn_bf = jax.block_until_ready(
        mha_bf16(params, key_in, value_in, query_in))
    assert out_bf.shape == (B, S, M) and attn_bf.shape == (B * H, S, S)
    assert jnp.allclose(out_bf, ref_out, atol=5e-2, rtol=5e-2)
    assert jnp.allclose(attn_bf, ref_attn, atol=2e-2, rtol=2e-2)

    print("KERNEL_OK")
</pallas_src>

<mosaic_0001>
module attributes {stable_mosaic.version = 11 : i64} {
  func.func @_qkv_proj_kernel(%arg0: i32, %arg1: i32, %arg2: memref<8x32xf32, #tpu.memory_space<vmem>>, %arg3: memref<8x32xf32, #tpu.memory_space<vmem>>, %arg4: memref<32x32xf32, #tpu.memory_space<vmem>>, %arg5: memref<32x32xf32, #tpu.memory_space<vmem>>, %arg6: memref<32x32xf32, #tpu.memory_space<vmem>>, %arg7: memref<1x32xf32, #tpu.memory_space<vmem>>, %arg8: memref<1x32xf32, #tpu.memory_space<vmem>>, %arg9: memref<1x32xf32, #tpu.memory_space<vmem>>, %arg10: memref<8x32xf32, #tpu.memory_space<vmem>>, %arg11: memref<8x32xf32, #tpu.memory_space<vmem>>, %arg12: memref<8x32xf32, #tpu.memory_space<vmem>>) attributes {dimension_semantics = [#tpu.dimension_semantics<parallel>, #tpu.dimension_semantics<parallel>], iteration_bounds = array<i64: 2, 1>, scalar_prefetch = 0 : i64, scratch_operands = 0 : i64, tpu.core_type = #tpu.core_type<tc>, window_params = [{transform_indices = @transform_0, window_bounds = array<i64: 8, 32>}, {transform_indices = @transform_1, window_bounds = array<i64: 8, 32>}, {transform_indices = @transform_2, window_bounds = array<i64: 32, 32>}, {transform_indices = @transform_3, window_bounds = array<i64: 32, 32>}, {transform_indices = @transform_4, window_bounds = array<i64: 32, 32>}, {transform_indices = @transform_5, window_bounds = array<i64: 1, 32>}, {transform_indices = @transform_6, window_bounds = array<i64: 1, 32>}, {transform_indices = @transform_7, window_bounds = array<i64: 1, 32>}, {transform_indices = @transform_8, window_bounds = array<i64: 8, 32>}, {transform_indices = @transform_9, window_bounds = array<i64: 8, 32>}, {transform_indices = @transform_10, window_bounds = array<i64: 8, 32>}]} {
    %c0 = arith.constant 0 : index
    %c0_0 = arith.constant 0 : index
    %0 = vector.load %arg2[%c0, %c0_0] : memref<8x32xf32, #tpu.memory_space<vmem>>, vector<8x32xf32>
    %c0_1 = arith.constant 0 : index
    %c0_2 = arith.constant 0 : index
    %1 = vector.load %arg3[%c0_1, %c0_2] : memref<8x32xf32, #tpu.memory_space<vmem>>, vector<8x32xf32>
    %c0_3 = arith.constant 0 : index
    %c0_4 = arith.constant 0 : index
    %2 = vector.load %arg4[%c0_3, %c0_4] : memref<32x32xf32, #tpu.memory_space<vmem>>, vector<32x32xf32>
    %cst = arith.constant dense<0.000000e+00> : vector<8x32xf32>
    %3 = tpu.matmul %0, %2, %cst {dimension_numbers = #tpu.dot_dimension_numbers<[1], [0], [0], [1], [0, 0, 1, 1], [], []>} : vector<8x32xf32>, vector<32x32xf32>, vector<8x32xf32> -> vector<8x32xf32>
    %c0_5 = arith.constant 0 : index
    %c0_6 = arith.constant 0 : index
    %4 = vector.load %arg7[%c0_5, %c0_6] : memref<1x32xf32, #tpu.memory_space<vmem>>, vector<1x32xf32>
    %5 = vector.broadcast %4 : vector<1x32xf32> to vector<8x32xf32>
    %6 = arith.addf %3, %5 : vector<8x32xf32>
    %c0_7 = arith.constant 0 : index
    %c0_8 = arith.constant 0 : index
    %7 = vector.load %arg10[%c0_7, %c0_8] : memref<8x32xf32, #tpu.memory_space<vmem>>, vector<8x32xf32>
    tpu.vector_store %arg10[%c0_7, %c0_8], %6 {strides = array<i32>} : memref<8x32xf32, #tpu.memory_space<vmem>>, vector<8x32xf32>,
    %c0_9 = arith.constant 0 : index
    %c0_10 = arith.constant 0 : index
    %8 = vector.load %arg5[%c0_9, %c0_10] : memref<32x32xf32, #tpu.memory_space<vmem>>, vector<32x32xf32>
    %cst_11 = arith.constant dense<0.000000e+00> : vector<8x32xf32>
    %9 = tpu.matmul %0, %8, %cst_11 {dimension_numbers = #tpu.dot_dimension_numbers<[1], [0], [0], [1], [0, 0, 1, 1], [], []>} : vector<8x32xf32>, vector<32x32xf32>, vector<8x32xf32> -> vector<8x32xf32>
    %c0_12 = arith.constant 0 : index
    %c0_13 = arith.constant 0 : index
    %10 = vector.load %arg8[%c0_12, %c0_13] : memref<1x32xf32, #tpu.memory_space<vmem>>, vector<1x32xf32>
    %11 = vector.broadcast %10 : vector<1x32xf32> to vector<8x32xf32>
    %12 = arith.addf %9, %11 : vector<8x32xf32>
    %c0_14 = arith.constant 0 : index
    %c0_15 = arith.constant 0 : index
    %13 = vector.load %arg11[%c0_14, %c0_15] : memref<8x32xf32, #tpu.memory_space<vmem>>, vector<8x32xf32>
    tpu.vector_store %arg11[%c0_14, %c0_15], %12 {strides = array<i32>} : memref<8x32xf32, #tpu.memory_space<vmem>>, vector<8x32xf32>,
    %c0_16 = arith.constant 0 : index
    %c0_17 = arith.constant 0 : index
    %14 = vector.load %arg6[%c0_16, %c0_17] : memref<32x32xf32, #tpu.memory_space<vmem>>, vector<32x32xf32>
    %cst_18 = arith.constant dense<0.000000e+00> : vector<8x32xf32>
    %15 = tpu.matmul %1, %14, %cst_18 {dimension_numbers = #tpu.dot_dimension_numbers<[1], [0], [0], [1], [0, 0, 1, 1], [], []>} : vector<8x32xf32>, vector<32x32xf32>, vector<8x32xf32> -> vector<8x32xf32>
    %c0_19 = arith.constant 0 : index
    %c0_20 = arith.constant 0 : index
    %16 = vector.load %arg9[%c0_19, %c0_20] : memref<1x32xf32, #tpu.memory_space<vmem>>, vector<1x32xf32>
    %17 = vector.broadcast %16 : vector<1x32xf32> to vector<8x32xf32>
    %18 = arith.addf %15, %17 : vector<8x32xf32>
    %cst_21 = arith.constant 0.707106769 : f32
    %19 = vector.broadcast %cst_21 : f32 to vector<8x32xf32>
    %20 = arith.mulf %18, %19 : vector<8x32xf32>
    %c0_22 = arith.constant 0 : index
    %c0_23 = arith.constant 0 : index
    %21 = vector.load %arg12[%c0_22, %c0_23] : memref<8x32xf32, #tpu.memory_space<vmem>>, vector<8x32xf32>
    tpu.vector_store %arg12[%c0_22, %c0_23], %20 {strides = array<i32>} : memref<8x32xf32, #tpu.memory_space<vmem>>, vector<8x32xf32>,
    return
  }
  func.func @transform_0(%arg0: i32, %arg1: i32) -> (i32, i32) {
    %c0_i32 = arith.constant 0 : i32
    %c0_i32_0 = arith.constant 0 : i32
    return %arg0, %c0_i32 : i32, i32
  }
  func.func @transform_1(%arg0: i32, %arg1: i32) -> (i32, i32) {
    %c0_i32 = arith.constant 0 : i32
    %c0_i32_0 = arith.constant 0 : i32
    return %arg0, %c0_i32 : i32, i32
  }
  func.func @transform_2(%arg0: i32, %arg1: i32) -> (i32, i32) {
    %c0_i32 = arith.constant 0 : i32
    %c0_i32_0 = arith.constant 0 : i32
    return %c0_i32, %arg1 : i32, i32
  }
  func.func @transform_3(%arg0: i32, %arg1: i32) -> (i32, i32) {
    %c0_i32 = arith.constant 0 : i32
    %c0_i32_0 = arith.constant 0 : i32
    return %c0_i32, %arg1 : i32, i32
  }
  func.func @transform_4(%arg0: i32, %arg1: i32) -> (i32, i32) {
    %c0_i32 = arith.constant 0 : i32
    %c0_i32_0 = arith.constant 0 : i32
    return %c0_i32, %arg1 : i32, i32
  }
  func.func @transform_5(%arg0: i32, %arg1: i32) -> (i32, i32) {
    %c0_i32 = arith.constant 0 : i32
    %c0_i32_0 = arith.constant 0 : i32
    return %c0_i32, %arg1 : i32, i32
  }
  func.func @transform_6(%arg0: i32, %arg1: i32) -> (i32, i32) {
    %c0_i32 = arith.constant 0 : i32
    %c0_i32_0 = arith.constant 0 : i32
    return %c0_i32, %arg1 : i32, i32
  }
  func.func @transform_7(%arg0: i32, %arg1: i32) -> (i32, i32) {
    %c0_i32 = arith.constant 0 : i32
    %c0_i32_0 = arith.constant 0 : i32
    return %c0_i32, %arg1 : i32, i32
  }
  func.func @transform_8(%arg0: i32, %arg1: i32) -> (i32, i32) {
    %c0_i32 = arith.constant 0 : i32
    return %arg0, %arg1 : i32, i32
  }
  func.func @transform_9(%arg0: i32, %arg1: i32) -> (i32, i32) {
    %c0_i32 = arith.constant 0 : i32
    return %arg0, %arg1 : i32, i32
  }
  func.func @transform_10(%arg0: i32, %arg1: i32) -> (i32, i32) {
    %c0_i32 = arith.constant 0 : i32
    return %arg0, %arg1 : i32, i32
  }
}

module attributes {stable_mosaic.version = 11 : i64} {
  func.func @_attention_kernel(%arg0: i32, %arg1: i32, %arg2: memref<4x8x8xf32, #tpu.memory_space<vmem>>, %arg3: memref<4x8x8xf32, #tpu.memory_space<vmem>>, %arg4: memref<4x8x8xf32, #tpu.memory_space<vmem>>, %arg5: memref<4x8x8xf32, #tpu.memory_space<vmem>>, %arg6: memref<4x8x8xf32, #tpu.memory_space<vmem>>) attributes {dimension_semantics = [#tpu.dimension_semantics<parallel>, #tpu.dimension_semantics<parallel>], iteration_bounds = array<i64: 2, 1>, scalar_prefetch = 0 : i64, scratch_operands = 0 : i64, tpu.core_type = #tpu.core_type<tc>, window_params = [{transform_indices = @transform_0, window_bounds = array<i64: 4, 8, 8>}, {transform_indices = @transform_1, window_bounds = array<i64: 4, 8, 8>}, {transform_indices = @transform_2, window_bounds = array<i64: 4, 8, 8>}, {transform_indices = @transform_3, window_bounds = array<i64: 4, 8, 8>}, {transform_indices = @transform_4, window_bounds = array<i64: 4, 8, 8>}]} {
    %c0 = arith.constant 0 : index
    %c0_0 = arith.constant 0 : index
    %c0_1 = arith.constant 0 : index
    %0 = vector.load %arg2[%c0, %c0_0, %c0_1] : memref<4x8x8xf32, #tpu.memory_space<vmem>>, vector<4x8x8xf32>
    %c0_2 = arith.constant 0 : index
    %c0_3 = arith.constant 0 : index
    %c0_4 = arith.constant 0 : index
    %1 = vector.load %arg3[%c0_2, %c0_3, %c0_4] : memref<4x8x8xf32, #tpu.memory_space<vmem>>, vector<4x8x8xf32>
    %c0_5 = arith.constant 0 : index
    %c0_6 = arith.constant 0 : index
    %c0_7 = arith.constant 0 : index
    %2 = vector.load %arg4[%c0_5, %c0_6, %c0_7] : memref<4x8x8xf32, #tpu.memory_space<vmem>>, vector<4x8x8xf32>
    "tpu.trace_start"() <{level = 10 : i32, message = "bqd,bkd->bqk"}> : () -> ()
    %cst = arith.constant dense<0.000000e+00> : vector<4x8x8xf32>
    %3 = tpu.matmul %0, %1, %cst {dimension_numbers = #tpu.dot_dimension_numbers<[2], [2], [1], [1], [0, 0, 0, 1, 1, 1], [0], [0]>} : vector<4x8x8xf32>, vector<4x8x8xf32>, vector<4x8x8xf32> -> vector<4x8x8xf32>
    "tpu.trace_stop"() : () -> ()
    %cst_8 = arith.constant dense<0xFF800000> : vector<4x8xf32>
    %4 = vector.multi_reduction <maximumf>, %3, %cst_8 [2] : vector<4x8x8xf32> to vector<4x8xf32>
    %5 = vector.shape_cast %4 : vector<4x8xf32> to vector<4x8x1xf32>
    %6 = vector.broadcast %5 : vector<4x8x1xf32> to vector<4x8x8xf32>
    %7 = arith.subf %3, %6 : vector<4x8x8xf32>
    %8 = math.exp %7 : vector<4x8x8xf32>
    %cst_9 = arith.constant dense<0.000000e+00> : vector<4x8xf32>
    %9 = vector.multi_reduction <add>, %8, %cst_9 [2] : vector<4x8x8xf32> to vector<4x8xf32>
    %10 = vector.shape_cast %9 : vector<4x8xf32> to vector<4x8x1xf32>
    %11 = tpu.reciprocal %10 : vector<4x8x1xf32> -> vector<4x8x1xf32>
    %12 = vector.broadcast %11 : vector<4x8x1xf32> to vector<4x8x8xf32>
    %13 = arith.mulf %8, %12 : vector<4x8x8xf32>
    %c0_10 = arith.constant 0 : index
    %c0_11 = arith.constant 0 : index
    %c0_12 = arith.constant 0 : index
    %14 = vector.load %arg6[%c0_10, %c0_11, %c0_12] : memref<4x8x8xf32, #tpu.memory_space<vmem>>, vector<4x8x8xf32>
    tpu.vector_store %arg6[%c0_10, %c0_11, %c0_12], %13 {strides = array<i32>} : memref<4x8x8xf32, #tpu.memory_space<vmem>>, vector<4x8x8xf32>,
    "tpu.trace_start"() <{level = 10 : i32, message = "bqk,bkd->bqd"}> : () -> ()
    %cst_13 = arith.constant dense<0.000000e+00> : vector<4x8x8xf32>
    %15 = tpu.matmul %13, %2, %cst_13 {dimension_numbers = #tpu.dot_dimension_numbers<[2], [1], [1], [2], [0, 0, 0, 1, 1, 2], [0], [0]>} : vector<4x8x8xf32>, vector<4x8x8xf32>, vector<4x8x8xf32> -> vector<4x8x8xf32>
    "tpu.trace_stop"() : () -> ()
    %c0_14 = arith.constant 0 : index
    %c0_15 = arith.constant 0 : index
    %c0_16 = arith.constant 0 : index
    %16 = vector.load %arg5[%c0_14, %c0_15, %c0_16] : memref<4x8x8xf32, #tpu.memory_space<vmem>>, vector<4x8x8xf32>
    tpu.vector_store %arg5[%c0_14, %c0_15, %c0_16], %15 {strides = array<i32>} : memref<4x8x8xf32, #tpu.memory_space<vmem>>, vector<4x8x8xf32>,
    return
  }
  func.func @transform_0(%arg0: i32, %arg1: i32) -> (i32, i32, i32) {
    %c0_i32 = arith.constant 0 : i32
    %c0_i32_0 = arith.constant 0 : i32
    return %arg0, %arg1, %c0_i32 : i32, i32, i32
  }
  func.func @transform_1(%arg0: i32, %arg1: i32) -> (i32, i32, i32) {
    %c0_i32 = arith.constant 0 : i32
    %c0_i32_0 = arith.constant 0 : i32
    %c0_i32_1 = arith.constant 0 : i32
    return %arg0, %c0_i32, %c0_i32_0 : i32, i32, i32
  }
  func.func @transform_2(%arg0: i32, %arg1: i32) -> (i32, i32, i32) {
    %c0_i32 = arith.constant 0 : i32
    %c0_i32_0 = arith.constant 0 : i32
    %c0_i32_1 = arith.constant 0 : i32
    return %arg0, %c0_i32, %c0_i32_0 : i32, i32, i32
  }
  func.func @transform_3(%arg0: i32, %arg1: i32) -> (i32, i32, i32) {
    %c0_i32 = arith.constant 0 : i32
    %c0_i32_0 = arith.constant 0 : i32
    return %arg0, %arg1, %c0_i32 : i32, i32, i32
  }
  func.func @transform_4(%arg0: i32, %arg1: i32) -> (i32, i32, i32) {
    %c0_i32 = arith.constant 0 : i32
    %c0_i32_0 = arith.constant 0 : i32
    return %arg0, %arg1, %c0_i32 : i32, i32, i32
  }
}

module attributes {stable_mosaic.version = 11 : i64} {
  func.func @_out_ln_kernel(%arg0: i32, %arg1: i32, %arg2: memref<8x32xf32, #tpu.memory_space<vmem>>, %arg3: memref<32x32xf32, #tpu.memory_space<vmem>>, %arg4: memref<1x32xf32, #tpu.memory_space<vmem>>, %arg5: memref<8x32xf32, #tpu.memory_space<vmem>>, %arg6: memref<1x32xf32, #tpu.memory_space<vmem>>, %arg7: memref<1x32xf32, #tpu.memory_space<vmem>>, %arg8: memref<8x32xf32, #tpu.memory_space<vmem>>, %arg9: memref<8x32xf32, #tpu.memory_space<vmem>>) attributes {dimension_semantics = [#tpu.dimension_semantics<parallel>, #tpu.dimension_semantics<arbitrary>], iteration_bounds = array<i64: 2, 1>, scalar_prefetch = 0 : i64, scratch_operands = 1 : i64, tpu.core_type = #tpu.core_type<tc>, window_params = [{transform_indices = @transform_0, window_bounds = array<i64: 8, 32>}, {transform_indices = @transform_1, window_bounds = array<i64: 32, 32>}, {pipeline_mode = #tpu.pipeline_mode<synchronous>, transform_indices = @transform_2, window_bounds = array<i64: 1, 32>}, {transform_indices = @transform_3, window_bounds = array<i64: 8, 32>}, {pipeline_mode = #tpu.pipeline_mode<synchronous>, transform_indices = @transform_4, window_bounds = array<i64: 1, 32>}, {pipeline_mode = #tpu.pipeline_mode<synchronous>, transform_indices = @transform_5, window_bounds = array<i64: 1, 32>}, {transform_indices = @transform_6, window_bounds = array<i64: 8, 32>}]} {
    %c0_i32 = arith.constant 0 : i32
    %0 = arith.cmpi eq, %arg1, %c0_i32 : i32
    %1 = arith.extui %0 : i1 to i32
    %c0_i32_0 = arith.constant 0 : i32
    %2 = arith.cmpi ne, %1, %c0_i32_0 : i32
    scf.if %2 {
      %cst_10 = arith.constant 0.000000e+00 : f32
      %12 = vector.broadcast %cst_10 : f32 to vector<8x32xf32>
      %c0_11 = arith.constant 0 : index
      %c0_12 = arith.constant 0 : index
      %13 = vector.load %arg9[%c0_11, %c0_12] : memref<8x32xf32, #tpu.memory_space<vmem>>, vector<8x32xf32>
      tpu.vector_store %arg9[%c0_11, %c0_12], %12 {strides = array<i32>} : memref<8x32xf32, #tpu.memory_space<vmem>>, vector<8x32xf32>,
    } else {
    }
    %c0 = arith.constant 0 : index
    %c0_1 = arith.constant 0 : index
    %3 = vector.load %arg9[%c0, %c0_1] : memref<8x32xf32, #tpu.memory_space<vmem>>, vector<8x32xf32>
    %c0_2 = arith.constant 0 : index
    %c0_3 = arith.constant 0 : index
    %4 = vector.load %arg2[%c0_2, %c0_3] : memref<8x32xf32, #tpu.memory_space<vmem>>, vector<8x32xf32>
    %c0_4 = arith.constant 0 : index
    %c0_5 = arith.constant 0 : index
    %5 = vector.load %arg3[%c0_4, %c0_5] : memref<32x32xf32, #tpu.memory_space<vmem>>, vector<32x32xf32>
    %cst = arith.constant dense<0.000000e+00> : vector<8x32xf32>
    %6 = tpu.matmul %4, %5, %cst {dimension_numbers = #tpu.dot_dimension_numbers<[1], [0], [0], [1], [0, 0, 1, 1], [], []>} : vector<8x32xf32>, vector<32x32xf32>, vector<8x32xf32> -> vector<8x32xf32>
    %7 = arith.addf %3, %6 : vector<8x32xf32>
    %c0_6 = arith.constant 0 : index
    %c0_7 = arith.constant 0 : index
    %8 = vector.load %arg9[%c0_6, %c0_7] : memref<8x32xf32, #tpu.memory_space<vmem>>, vector<8x32xf32>
    tpu.vector_store %arg9[%c0_6, %c0_7], %7 {strides = array<i32>} : memref<8x32xf32, #tpu.memory_space<vmem>>, vector<8x32xf32>,
    %c0_i32_8 = arith.constant 0 : i32
    %9 = arith.cmpi eq, %arg1, %c0_i32_8 : i32
    %10 = arith.extui %9 : i1 to i32
    %c0_i32_9 = arith.constant 0 : i32
    %11 = arith.cmpi ne, %10, %c0_i32_9 : i32
    scf.if %11 {
      %c0_10 = arith.constant 0 : index
      %c0_11 = arith.constant 0 : index
      %12 = vector.load %arg9[%c0_10, %c0_11] : memref<8x32xf32, #tpu.memory_space<vmem>>, vector<8x32xf32>
      %c0_12 = arith.constant 0 : index
      %c0_13 = arith.constant 0 : index
      %13 = vector.load %arg4[%c0_12, %c0_13] : memref<1x32xf32, #tpu.memory_space<vmem>>, vector<1x32xf32>
      %14 = vector.broadcast %13 : vector<1x32xf32> to vector<8x32xf32>
      %15 = arith.addf %12, %14 : vector<8x32xf32>
      %c0_14 = arith.constant 0 : index
      %c0_15 = arith.constant 0 : index
      %16 = vector.load %arg5[%c0_14, %c0_15] : memref<8x32xf32, #tpu.memory_space<vmem>>, vector<8x32xf32>
      %17 = arith.addf %15, %16 : vector<8x32xf32>
      %cst_16 = arith.constant dense<0.000000e+00> : vector<8xf32>
      %18 = vector.multi_reduction <add>, %17, %cst_16 [1] : vector<8x32xf32> to vector<8xf32>
      %19 = vector.shape_cast %18 : vector<8xf32> to vector<8x1xf32>
      %cst_17 = arith.constant 3.200000e+01 : f32
      %20 = vector.broadcast %cst_17 : f32 to vector<8x1xf32>
      %21 = arith.divf %19, %20 : vector<8x1xf32>
      %22 = vector.broadcast %21 : vector<8x1xf32> to vector<8x32xf32>
      %23 = arith.subf %17, %22 : vector<8x32xf32>
      %24 = arith.mulf %23, %23 : vector<8x32xf32>
      %cst_18 = arith.constant dense<0.000000e+00> : vector<8xf32>
      %25 = vector.multi_reduction <add>, %24, %cst_18 [1] : vector<8x32xf32> to vector<8xf32>
      %26 = vector.shape_cast %25 : vector<8xf32> to vector<8x1xf32>
      %cst_19 = arith.constant 3.200000e+01 : f32
      %27 = vector.broadcast %cst_19 : f32 to vector<8x1xf32>
      %28 = arith.divf %26, %27 : vector<8x1xf32>
      %29 = vector.broadcast %21 : vector<8x1xf32> to vector<8x32xf32>
      %30 = arith.subf %17, %29 : vector<8x32xf32>
      %cst_20 = arith.constant 9.99999974E-6 : f32
      %31 = vector.broadcast %cst_20 : f32 to vector<8x1xf32>
      %32 = arith.addf %28, %31 : vector<8x1xf32>
      %33 = math.rsqrt %32 : vector<8x1xf32>
      %34 = vector.broadcast %33 : vector<8x1xf32> to vector<8x32xf32>
      %35 = arith.mulf %30, %34 : vector<8x32xf32>
      %c0_21 = arith.constant 0 : index
      %c0_22 = arith.constant 0 : index
      %36 = vector.load %arg6[%c0_21, %c0_22] : memref<1x32xf32, #tpu.memory_space<vmem>>, vector<1x32xf32>
      %37 = vector.broadcast %36 : vector<1x32xf32> to vector<8x32xf32>
      %38 = arith.mulf %35, %37 : vector<8x32xf32>
      %c0_23 = arith.constant 0 : index
      %c0_24 = arith.constant 0 : index
      %39 = vector.load %arg7[%c0_23, %c0_24] : memref<1x32xf32, #tpu.memory_space<vmem>>, vector<1x32xf32>
      %40 = vector.broadcast %39 : vector<1x32xf32> to vector<8x32xf32>
      %41 = arith.addf %38, %40 : vector<8x32xf32>
      %c0_25 = arith.constant 0 : index
      %c0_26 = arith.constant 0 : index
      %42 = vector.load %arg8[%c0_25, %c0_26] : memref<8x32xf32, #tpu.memory_space<vmem>>, vector<8x32xf32>
      tpu.vector_store %arg8[%c0_25, %c0_26], %41 {strides = array<i32>} : memref<8x32xf32, #tpu.memory_space<vmem>>, vector<8x32xf32>,
    } else {
    }
    return
  }
  func.func @transform_0(%arg0: i32, %arg1: i32) -> (i32, i32) {
    %c0_i32 = arith.constant 0 : i32
    return %arg0, %arg1 : i32, i32
  }
  func.func @transform_1(%arg0: i32, %arg1: i32) -> (i32, i32) {
    %c0_i32 = arith.constant 0 : i32
    %c0_i32_0 = arith.constant 0 : i32
    return %arg1, %c0_i32 : i32, i32
  }
  func.func @transform_2(%arg0: i32, %arg1: i32) -> (i32, i32) {
    %c0_i32 = arith.constant 0 : i32
    %c0_i32_0 = arith.constant 0 : i32
    %c0_i32_1 = arith.constant 0 : i32
    return %c0_i32, %c0_i32_0 : i32, i32
  }
  func.func @transform_3(%arg0: i32, %arg1: i32) -> (i32, i32) {
    %c0_i32 = arith.constant 0 : i32
    %c0_i32_0 = arith.constant 0 : i32
    return %arg0, %c0_i32 : i32, i32
  }
  func.func @transform_4(%arg0: i32, %arg1: i32) -> (i32, i32) {
    %c0_i32 = arith.constant 0 : i32
    %c0_i32_0 = arith.constant 0 : i32
    %c0_i32_1 = arith.constant 0 : i32
    return %c0_i32, %c0_i32_0 : i32, i32
  }
  func.func @transform_5(%arg0: i32, %arg1: i32) -> (i32, i32) {
    %c0_i32 = arith.constant 0 : i32
    %c0_i32_0 = arith.constant 0 : i32
    %c0_i32_1 = arith.constant 0 : i32
    return %c0_i32, %c0_i32_0 : i32, i32
  }
  func.func @transform_6(%arg0: i32, %arg1: i32) -> (i32, i32) {
    %c0_i32 = arith.constant 0 : i32
    %c0_i32_0 = arith.constant 0 : i32
    return %arg0, %c0_i32 : i32, i32
  }
}

</mosaic_0001>

<bundles_post_ra>
// kernel: multi_head_attention.3
= control target key start
LH: loop header
LB: loop body
LE: loop exit
PB: predicated region body
PF: predicated region fallthrough
CT: control target
= control target key end

     0   :  { %s1204_s13 = smov 0   ;;  %s1206_s14 = smov 0   ;;  %s1307_s0 = inlined_call_operand.vmem [shape: f32[16,32], index: 0, kind: input, shape index: {}]   ;;  %s1308_s1 = inlined_call_operand.vmem [shape: f32[16,32], index: 1, kind: input, shape index: {}]   ;;  %s1309_s2 = inlined_call_operand.vmem [shape: f32[32,32], index: 2, kind: input, shape index: {}]   ;;  %s1310_s3 = inlined_call_operand.vmem [shape: f32[32,32], index: 3, kind: input, shape index: {}]   ;;  %s1311_s4 = inlined_call_operand.vmem [shape: f32[32,32], index: 4, kind: input, shape index: {}]   ;;  %s1312_s5 = inlined_call_operand.vmem [shape: f32[1,32], index: 5, kind: input, shape index: {}]   ;;  %s1313_s6 = inlined_call_operand.vmem [shape: f32[1,32], index: 6, kind: input, shape index: {}]   ;;  %s1314_s7 = inlined_call_operand.vmem [shape: f32[1,32], index: 7, kind: input, shape index: {}]   ;;  %s1315_s8 = inlined_call_operand.vmem [shape: f32[16,32], index: 8, kind: output, shape index: {0}]   ;;  %s1316_s9 = inlined_call_operand.vmem [shape: f32[16,32], index: 9, kind: output, shape index: {1}]   ;;  %s1317_s10 = inlined_call_operand.vmem [shape: f32[16,32], index: 10, kind: output, shape index: {2}]  }
   0x1   :  { %s1208_s15 = smov 0  }
   0x2 LB: > { %s33_s16 = sadd.s32 1, %s1141_s14  ;;  %p1035_p0 = scmp.ge.s32.totalorder %s1145_s15, 1  ;;  %s1145_s15 = sphi %s1208_s15, %s21_s15   ;;  %s1141_s14 = sphi %s1206_s14, %s1319_s14   ;;  %s1137_s13 = sphi %s1204_s13, %s1318_s13  }
   0x3   : > { %p35_p1 = scmp.ge.s32.totalorder %s33_s16, 2  ;;  %p394_p2 = scmp.lt.s32.totalorder %s1145_s15, 3 }
   0x5   : > { %s1321_s16 = smov (%p35_p1, %s33_s16), 0  ;;  %p395_p3 = pnand %p1035_p0, %p394_p2 }
   0x6   : > { %p472_p4 = scmp.lt.s32.totalorder (!%p395_p3), %s1137_s13, 1 }
   0x7   : > { %398 = sbr.rel (%p395_p3) target bundleno = 227 (0xe3), region = 52 }
   0xc   : > { %v527_v0 = vld [vmem:[%s1309_s2 + $0x18] sm:$0xff]  ;;  %v1147_v1 = vmov 0.0   ;;  %v526_v2 = vld [vmem:[%s1309_s2 + $0x10] sm:$0xff]  ;;  %vm1148_vm0 = vmmov 0   ;;  %s1323_s13 = smov (!%p472_p4, %s1137_s13), 1  ;;  %v525_v5 = vld [vmem:[%s1309_s2 + $0x8] sm:$0xff] }
   0xd   : > { %1064 = vmatprep.subr.mxu0 %v1147_v1  ;;  %1072 = vmatprep.mubr.msk.f32.mxu0 %vm1148_vm0, %v1147_v1  ;;  %v613_v3 = vld [vmem:[%s1310_s3 + $0x18] sm:$0xff]  ;;  %v612_v4 = vld [vmem:[%s1310_s3 + $0x10] sm:$0xff]  ;;  %s1238_s27 = sshll.u32 %s1323_s13, 3  ;;  %v611_v6 = vld [vmem:[%s1310_s3 + $0x8] sm:$0xff]  ;;  %vm535_vm1 = vcmask 261120  }
   0xe   : > { %1065 = vmatpush3.msra.mxu0 %v527_v0  ;;  %1075 = vmatprep.subr.mxu1 %v1147_v1  ;;  %v524_v7 = vld [vmem:[%s1309_s2] sm:$0xff]  ;;  %s475_s18 = scalar_lea.vmem %s1307_s0, %s1238_s27  ;;  %v695_v9 = vld [vmem:[%s1311_s4 + $0x18] sm:$0xff]  ;;  %v694_v11 = vld [vmem:[%s1311_s4 + $0x10] sm:$0xff]  ;;  %s479_s29 = scalar_lea.vmem %s1308_s1, %s1238_s27 }
   0xf   : > { %1066 = vmatprep.subr.mxu0 %v1147_v1  ;;  %1076 = vmatpush3.msra.mxu1 %v613_v3  ;;  %v522_v8 = vld [vmem:[%s475_s18] sm:$0xff]  ;;  %v693_v12 = vld [vmem:[%s1311_s4 + $0x8] sm:$0xff]  ;;  %s507_s19 = scalar_lea.vmem %s1315_s8, %s1238_s27  ;;  %s514_s24 = scalar_lea.vmem %s1316_s9, %s1238_s27 }
  0x10   : > { %1067 = vmatpush3.msra.mxu0 %v526_v2  ;;  %1077 = vmatprep.subr.mxu1 %v1147_v1  ;;  %v610_v10 = vld [vmem:[%s1310_s3] sm:$0xff]  ;;  %s521_s30 = scalar_lea.vmem %s1317_s10, %s1238_s27 }
  0x11   : > { %1068 = vmatprep.subr.mxu0 %v1147_v1  ;;  %1078 = vmatpush3.msra.mxu1 %v612_v4  ;;  %v692_v13 = vld [vmem:[%s1311_s4] sm:$0xff] }
  0x12   : > { %1069 = vmatpush3.msra.mxu0 %v525_v5  ;;  %1079 = vmatprep.subr.mxu1 %v1147_v1  ;;  %v523_v14 = vld [vmem:[%s479_s29] sm:$0xff] }
  0x13   : > { %1070 = vmatprep.subr.mxu0 %v1147_v1  ;;  %1080 = vmatpush3.msra.mxu1 %v611_v6  ;;  %v1041_v15 = vld [vmem:[%s1312_s5] ss:$0 sm:$0xff] }
  0x14   : > { %1071 = vmatpush3.msra.mxu0 %v524_v7  ;;  %1081 = vmatprep.subr.mxu1 %v1147_v1  ;;  %v1043_v19 = vld [vmem:[%s1313_s6] ss:$0 sm:$0xff] }
  0x15   : > { %1073 = vmatmul.mubr.msk.f32.vlgmr.msra.gmra.mxu0 %vm535_vm1, %v522_v8  ;;  %1086 = vmatprep.subr.mxu0 %v1147_v1  ;;  %v1045_v22 = vld [vmem:[%s1314_s7] ss:$0 sm:$0xff] }
  0x16   : > { %1087 = vmatpush3.msra.mxu0 %v695_v9  ;;  %1082 = vmatpush3.msra.mxu1 %v610_v10 }
  0x17   : > { %1088 = vmatprep.subr.mxu0 %v1147_v1  ;;  %1083 = vmatprep.mubr.msk.f32.mxu1 %vm1148_vm0, %v1147_v1 }
  0x18   : > { %1089 = vmatpush3.msra.mxu0 %v694_v11  ;;  %1094 = vmatprep.mubr.msk.f32.mxu0 %vm1148_vm0, %v1147_v1 }
  0x19   : > { %1090 = vmatprep.subr.mxu0 %v1147_v1  ;;  %1084 = vmatmul.mubr.msk.f32.vlgmr.msra.gmra.mxu1 %vm535_vm1, %v522_v8 }
  0x1a   : > { %1091 = vmatpush3.msra.mxu0 %v693_v12 }
  0x1b   : > { %1092 = vmatprep.subr.mxu0 %v1147_v1 }
  0x1c   : > { %1093 = vmatpush3.msra.mxu0 %v692_v13 }
  0x1d   : > { %1095 = vmatmul.mubr.msk.f32.vlgmr.msra.gmra.mxu0 %vm535_vm1, %v523_v14 }
  0xd5   : > { %v605_v16 = vpop.f32.mrf.mxu0 }
  0xd6   : > { %v606_v17 = vadd.f32 %v1041_v15, %v605_v16 }
  0xd7   : > { %v1074_v18 = vpop.f32.mrf.mxu0 }
  0xd8   : > { %609 = vst.msk [vmem:[%s507_s19] sm:$0xff] %vm535_vm1, %v606_v17 }
  0xd9   : > { %v687_v20 = vpop.f32.mrf.mxu1 }
  0xda   : > { %v688_v21 = vadd.f32 %v1043_v19, %v687_v20 }
  0xdb   : > { %v1085_v23 = vpop.f32.mrf.mxu1 }
  0xdc   : > { %691 = vst.msk [vmem:[%s514_s24] sm:$0xff] %vm535_vm1, %v688_v21 }
  0xdd   : > { %v772_v24 = vpop.f32.mrf.mxu0 }
  0xde   : > { %v773_v25 = vadd.f32 %v1045_v22, %v772_v24 }
  0xdf   : > { %v1096_v26 = vpop.f32.mrf.mxu0 }
  0xe0   : > { %v776_v27 = vmul.f32 0.70710677, %v773_v25 }
  0xe2   : > { %777 = vst.msk [vmem:[%s521_s30] sm:$0xff] %vm535_vm1, %v776_v27 }
  0xe3 PF: > { %s21_s15 = sadd.s32 1, %s1145_s15   ;;  %s1318_s13 = smov %s1141_s14 }
  0xe4   : > { %p18_p5 = scmp.ge.s32.totalorder %s21_s15, 4   ;;  %s1319_s14 = smov %s1321_s16 }
  0xe6   :  { %20 = sbr.rel (!%p18_p5) target bundleno = 2 (0x2), region = 127 }

// kernel: multi_head_attention.5
= control target key start
LH: loop header
LB: loop body
LE: loop exit
PB: predicated region body
PF: predicated region fallthrough
CT: control target
= control target key end

     0   :  { %11 = vsyncpa [#allocation4], 0  ;;  %s890_s0 = inlined_call_operand.vmem [shape: f32[16,32], index: 0, kind: input, shape index: {}]   ;;  %s891_s1 = inlined_call_operand.vmem [shape: f32[32,32], index: 1, kind: input, shape index: {}]   ;;  %s892_s2 = inlined_call_operand.vmem [shape: f32[1,32], index: 2, kind: input, shape index: {}]   ;;  %s893_s3 = inlined_call_operand.vmem [shape: f32[16,32], index: 3, kind: input, shape index: {}]   ;;  %s894_s4 = inlined_call_operand.vmem [shape: f32[1,32], index: 4, kind: input, shape index: {}]   ;;  %s895_s5 = inlined_call_operand.vmem [shape: f32[1,32], index: 5, kind: input, shape index: {}]   ;;  %s896_s6 = inlined_call_operand.hbm [shape: f32[16,32], index: 6, kind: output, shape index: {}]  }
   0x1   :  { %13 = vsyncpa [#allocation4 + $0x1], 0  ;;  %s761_s21 = smov 0   ;;  %s763_s22 = smov 0  }
   0x2   :  { %s765_s23 = smov 0   ;;  %s767_s24 = smov 0  }
   0x3   :  { %s769_s25 = smov 0   ;;  %s771_s26 = smov 0  }
   0x4 LB: > { %s553_s27 = sadd.s32 4294967295, %s721_s26   ;;  %s554_s28 = sadd.s32 4294967294, %s721_s26   ;;  %s721_s26 = sphi %s771_s26, %s19_s26   ;;  %s717_s25 = sphi %s769_s25, %s903_s25   ;;  %s713_s24 = sphi %s767_s24, %s902_s24   ;;  %s709_s23 = sphi %s765_s23, %s901_s23   ;;  %s705_s22 = sphi %s763_s22, %s900_s22   ;;  %s701_s21 = sphi %s761_s21, %s899_s21  }
   0x5   : > { %s31_s29 = sadd.s32 1, %s717_s25  ;;  %s181_s30 = sadd.s32 1, %s709_s23 }
   0x6   : > { %p33_p0 = scmp.ge.s32.totalorder %s31_s29, 2  ;;  %p191_p1 = scmp.ne.s32.totalorder %s709_s23, %s705_s22 }
   0x7   : > { %p192_p2 = scmp.eq.s32.totalorder %s553_s27, 1  ;;  %p197_p3 = scmp.ne.s32.totalorder %s705_s22, %s701_s21 }
   0x8   : > { %s905_s29 = smov (%p33_p0, %s31_s29), 0  ;;  %p198_p5 = scmp.eq.s32.totalorder %s554_s28, 1 }
   0x9   : > { %p801_p4 = por %p192_p2, %p191_p1  ;;  %s178_s8 = ssub.s32 %s717_s25, %s905_s29 }
   0xa   : > { %p558_p6 = scmp.ge.s32.totalorder %s721_s26, 1  ;;  %p179_p7 = scmp.eq.s32.totalorder %s178_s8, 0 }
   0xb   : > { %p808_p8 = por %p198_p5, %p197_p3  ;;  %p251_p9 = scmp.lt.s32.totalorder %s721_s26, 3 }
   0xc   : > { %s814_s10 = scalar_select %p179_p7, %s709_s23, %s181_s30  }
   0xd   : > { %p252_p10 = pnand %p558_p6, %p251_p9 }
   0xe   : > { %p292_p11 = scmp.lt.s32.totalorder (!%p252_p10), %s713_s24, 1  ;;  %s567_s27 = sshll.u32 (!%p252_p10), %s713_s24, 7 }
   0xf   : > { %255 = sbr.rel (%p252_p10) target bundleno = 557 (0x22d), region = 44  ;;  %s725_s17 = smov (!%p252_p10), [#allocation3]  }
  0x14   : > { %v320_v0 = vld [vmem:[%s891_s1 + $0x18] sm:$0xff]  ;;  %v723_v1 = vmov 0.0   ;;  %v319_v2 = vld [vmem:[%s891_s1 + $0x10] sm:$0xff]  ;;  %vm724_vm0 = vmmov 0   ;;  %vm313_vm1 = vcmask 261120   ;;  %s293_s15 = scalar_select %p292_p11, %s713_s24, 1 }
  0x15   : > { %575 = vmatprep.subr.mxu0 %v723_v1  ;;  %583 = vmatprep.mubr.msk.f32.mxu0 %vm724_vm0, %v723_v1  ;;  %314 = vst.msk [vmem:[#allocation2] sm:$0xff] %vm313_vm1, %v723_v1  ;;  %v318_v3 = vld [vmem:[%s891_s1 + $0x8] sm:$0xff]  ;;  %v317_v4 = vld [vmem:[%s891_s1] sm:$0xff] }
  0x16   : > { %576 = vmatpush3.msra.mxu0 %v320_v0  ;;  %s560_s18 = sshll.u32 %s293_s15, 3  ;;  %v563_v10 = vld [vmem:[%s892_s2] ss:$0 sm:$0xff]  ;;  %s289_s15 = sand.u32 1, %s705_s22  }
  0x17   : > { %577 = vmatprep.subr.mxu0 %v723_v1  ;;  %s298_s30 = scalar_lea.vmem %s890_s0, %s560_s18  ;;  %s308_s12 = scalar_lea.vmem %s893_s3, %s560_s18  ;;  %v564_v25 = vld [vmem:[%s894_s4] ss:$0 sm:$0xff] }
  0x18   : > { %578 = vmatpush3.msra.mxu0 %v319_v2  ;;  %v316_v5 = vld [vmem:[%s298_s30] sm:$0xff]  ;;  %s559_s16 = sshll.u32 %s289_s15, 3  ;;  %s443_s13 = scalar_lea.sflag [#allocation4], %s289_s15 }
  0x19   : > { %579 = vmatprep.subr.mxu0 %v723_v1  ;;  %v409_v12 = vld [vmem:[%s308_s12] sm:$0xff]  ;;  %s291_s28 = scalar_lea.vmem [#allocation3], %s559_s16  ;;  %s454_s12 = scalar_lea.hbm %s896_s6, %s567_s27 }
  0x1a   : > { %580 = vmatpush3.msra.mxu0 %v318_v3  ;;  %v565_v27 = vld [vmem:[%s895_s5] ss:$0 sm:$0xff]  ;;  %s456_s30 = sshll.u32 %s291_s28, 4  ;;  %s649_s18 = sshll.u32 %s725_s17, 4  ;;  %s457_s30 = int_to_ptr.vmem [resolvable:$true] %s456_s30  ;;  %s650_s18 = int_to_ptr.vmem [resolvable:$false] %s649_s18 }
  0x1b   : > { %581 = vmatprep.subr.mxu0 %v723_v1  ;;  %s645_s14 = scalar_lea.vmem %s457_s30, 128  ;;  %s651_s24 = scalar_lea.vmem %s650_s18, 256 }
  0x1c   : > { %582 = vmatpush3.msra.mxu0 %v317_v4  ;;  %v315_v6 = vld [vmem:[#allocation2] sm:$0xff]  ;;  %p646_p12 = scmp.ne.s32.totalorder %s457_s30, %s645_s14  ;;  %p652_p1 = scmp.lt.s32.totalorder %s457_s30, %s650_s18 }
  0x1d   : > { %584 = vmatmul.mubr.msk.f32.vlgmr.msra.gmra.mxu0 %vm313_vm1, %v316_v5  ;;  %p653_p2 = scmp.lt.s32.totalorder %s651_s24, %s645_s14 }
  0x1e   : > { %p647_p13 = pnand %p646_p12, %p801_p4 }
  0x1f   : > { %p654_p3 = por %p653_p2, %p652_p1 }
  0x20   : > { %p648_p0 = pneg %p647_p13 }
  0x22   : > { %p655_p5 = pnand %p654_p3, %p648_p0 }
  0xdd   : > { %v391_v7 = vpop.f32.mrf.mxu0 }
  0xde   : > { %v395_v8 = vadd.f32 %v391_v7, %v315_v6 }
  0xdf   : > { %v585_v9 = vpop.f32.mrf.mxu0 }
  0xe0   : > { %396 = vst.msk [vmem:[#allocation2] sm:$0xff] %vm313_vm1, %v395_v8 }
  0xe7   : > { %v400_v11 = vld [vmem:[#allocation2] sm:$0xff] }
  0xe8   : > { %v408_v13 = vadd.f32 %v563_v10, %v400_v11 }
  0xea   : > { %v410_v14 = vadd.f32 %v409_v12, %v408_v13 }
  0xec   : > { %v411_v15 = vsel %vm313_vm1, %v410_v14, 0.0 }
  0xed   : > { %412 = vadd.xlane.f32.xlu0 %v411_v15 }
 0x176   : > { %v413_v16 = vpop.xlane.xlu0 %412 }
 0x177   : > { %v415_v17 = vmul.f32 0.03125, %v413_v16 }
 0x179   : > { %v416_v18 = vsub.f32 %v410_v14, %v415_v17 }
 0x17b   : > { %v417_v19 = vmul.f32 %v416_v18, %v416_v18 }
 0x17d   : > { %v418_v20 = vsel %vm313_vm1, %v417_v19, 0.0 }
 0x17e   : > { %419 = vadd.xlane.f32.xlu0 %v418_v20 }
 0x207   : > { %v420_v21 = vpop.xlane.xlu0 %419 }
 0x208   : > { %v421_v22 = vmul.f32 0.03125, %v420_v21 }
 0x20a   : > { %v422_v23 = vadd.f32 1e-05, %v421_v22 }
 0x20c   : > { %643 = vrsqrt.f32 %v422_v23 }
 0x219   : > { %v644_v24 = vpop.eup %643 }
 0x21a   : > { %v424_v26 = vmul.f32 %v644_v24, %v416_v18 }
 0x21c   : > { %v432_v28 = vmul.f32 %v564_v25, %v424_v26 }
 0x21e   : > { %v440_v29 = vadd.f32 %v565_v27, %v432_v28 }
 0x220   : > { %441 = vst.msk [vmem:[%s291_s28] sm:$0xff] %vm313_vm1, %v440_v29 }
 0x221   : > { %658 = shalt.err (!%p655_p5)
}
 0x222   : > { %s659_s16 = scalar_lea.hbm %s454_s12, 128  ;;  %s663_s20 = scalar_lea.hbm %s896_s6, 256 }
 0x223   : > { %p660_p6 = scmp.ne.s32.totalorder %s454_s12, %s659_s16  ;;  %p664_p10 = scmp.lt.s32.totalorder %s454_s12, %s896_s6 }
 0x224   : > { %p665_p11 = scmp.lt.s32.totalorder %s663_s20, %s659_s16 }
 0x225   : > { %p661_p7 = pnand %p660_p6, %p801_p4 }
 0x226   : > { %p666_p12 = por %p665_p11, %p664_p10 }
 0x227   : > { %p662_p9 = pneg %p661_p7 }
 0x229   : > { %p667_p13 = pnand %p666_p12, %p662_p9 }
 0x22b   : > { %670 = shalt.err (!%p667_p13)
}
 0x22c   : > { %586 = dma.vmem_to_hbm [thread:$0]  (%p801_p4), %s457_s30, 128, %s454_s12, %s443_s13  }
 0x22d PF: > { %p592_p0 = scmp.ge.s32.totalorder %s721_s26, 2  ;;  %s468_s8 = sand.u32 1, %s701_s21  }
 0x22e   : > { %s469_s11 = scalar_lea.sflag [#allocation4], %s468_s8 }
 0x22f   : > { %p589_p1 = pnand %p592_p0, %p808_p8 }
 0x231   : > { %p590_p2 = pneg %p589_p1 }
 0x233   : > { %696 = dma.done.wait (%p590_p2), %s469_s11, 128  }
 0x234   : > { %698 = vsyncadd (%p590_p2), %s469_s11, 4294967168  ;;  %s19_s26 = sadd.s32 1, %s721_s26   ;;  %s899_s21 = smov %s705_s22 }
 0x235   : > { %p16_p3 = scmp.ge.s32.totalorder %s19_s26, 4   ;;  %s900_s22 = smov %s709_s23 }
 0x236   : > { %s901_s23 = smov %s814_s10  ;;  %s902_s24 = smov %s717_s25 }
 0x237   : > { %s903_s25 = smov %s905_s29  ;;  %18 = sbr.rel (!%p16_p3) target bundleno = 4 (0x4), region = 93 }
 0x23c   :  { %474 = vsyncpa [#allocation4], 1 }
 0x23d   :  { %476 = vsyncpa [#allocation4 + $0x1], 1 }

// kernel: multi_head_attention.4
= control target key start
LH: loop header
LB: loop body
LE: loop exit
PB: predicated region body
PF: predicated region fallthrough
CT: control target
= control target key end

     0   :  { %10 = vsyncpa [#allocation3], 0  ;;  %s1564_s0 = inlined_call_operand.vmem [shape: f32[8,8,8], index: 0, kind: input, shape index: {}]   ;;  %s1565_s1 = inlined_call_operand.vmem [shape: f32[8,8,8], index: 1, kind: input, shape index: {}]   ;;  %s1566_s2 = inlined_call_operand.vmem [shape: f32[8,8,8], index: 2, kind: input, shape index: {}]   ;;  %s1567_s3 = inlined_call_operand.vmem [shape: f32[8,8,8], index: 3, kind: output, shape index: {0}]   ;;  %s1568_s4 = inlined_call_operand.hbm [shape: f32[8,8,8], index: 4, kind: output, shape index: {1}]  }
   0x1   :  { %12 = vsyncpa [#allocation3 + $0x1], 0  ;;  %s1380_s15 = smov 0   ;;  %s1382_s16 = smov 0  }
   0x2   :  { %s1384_s17 = smov 0   ;;  %s1386_s18 = smov 0  }
   0x3   :  { %s1388_s19 = smov 0   ;;  %s1390_s20 = smov 0  }
   0x4 LB: > { %s1109_s21 = sadd.s32 4294967295, %s1348_s20   ;;  %s1110_s22 = sadd.s32 4294967294, %s1348_s20   ;;  %s1348_s20 = sphi %s1390_s20, %s18_s20   ;;  %s1344_s19 = sphi %s1388_s19, %s1575_s19   ;;  %s1340_s18 = sphi %s1386_s18, %s1574_s18   ;;  %s1336_s17 = sphi %s1384_s17, %s1573_s17   ;;  %s1332_s16 = sphi %s1382_s16, %s1572_s16   ;;  %s1328_s15 = sphi %s1380_s15, %s1571_s15  }
   0x5   : > { %s30_s23 = sadd.s32 1, %s1344_s19  ;;  %s147_s24 = sadd.s32 1, %s1336_s17 }
   0x6   : > { %p32_p0 = scmp.ge.s32.totalorder %s30_s23, 2  ;;  %p157_p1 = scmp.ne.s32.totalorder %s1336_s17, %s1332_s16 }
   0x7   : > { %p158_p2 = scmp.eq.s32.totalorder %s1109_s21, 1  ;;  %p163_p3 = scmp.ne.s32.totalorder %s1332_s16, %s1328_s15 }
   0x8   : > { %s1577_s23 = smov (%p32_p0, %s30_s23), 0  ;;  %p164_p5 = scmp.eq.s32.totalorder %s1110_s22, 1 }
   0x9   : > { %p1420_p4 = por %p158_p2, %p157_p1  ;;  %s142_s26 = ssub.s32 %s1344_s19, %s1577_s23 }
   0xa   : > { %p1113_p6 = scmp.ge.s32.totalorder %s1348_s20, 1  ;;  %p145_p7 = scmp.eq.s32.totalorder %s142_s26, 0 }
   0xb   : > { %p1427_p8 = por %p164_p5, %p163_p3  ;;  %p212_p9 = scmp.lt.s32.totalorder %s1348_s20, 3 }
   0xc   : > { %s1433_s28 = scalar_select %p145_p7, %s1336_s17, %s147_s24  }
   0xd   : > { %p213_p10 = pnand %p1113_p6, %p212_p9 }
   0xe   : > { %s1115_s29 = sshll.u32 (!%p213_p10), %s1340_s18, 2  ;;  %s256_s14 = sand.u32 (!%p213_p10), 1, %s1332_s16  }
   0xf   : > { %216 = sbr.rel (%p213_p10) target bundleno = 735 (0x2df), region = 32  ;;  %p260_p11 = scmp.lt.s32.totalorder (!%p213_p10), %s1115_s29, 7 }
  0x10   : > { %s1114_s21 = sshll.u32 (!%p213_p10), %s256_s14, 5  ;;  %s1140_s24 = sshll.u32 (!%p213_p10), %s1340_s18, 9 }
  0x11   : > { %s258_s22 = scalar_lea.vmem (!%p213_p10), [#allocation2], %s1114_s21  ;;  %s1505_s6 = scalar_lea.hbm (!%p213_p10), %s1568_s4, %s1140_s24 }
  0x12   : > { %s978_s26 = sshll.u32 (!%p213_p10), %s258_s22, 4  ;;  %s1352_s18 = smov (!%p213_p10), [#allocation2]   ;;  %s1507_s26 = int_to_ptr.vmem [resolvable:$true] %s978_s26 }
  0x13   : > { %s1272_s8 = scalar_lea.vmem (!%p213_p10), %s1507_s26, 512  ;;  %s1276_s9 = sshll.u32 (!%p213_p10), %s1352_s18, 4  ;;  %s1277_s9 = int_to_ptr.vmem [resolvable:$false] %s1276_s9 }
  0x14   : > { %v1350_v0 = vmov 0.0   ;;  %vm1351_vm0 = vmmov 0   ;;  %s1579_s29 = smov (!%p260_p11, %s1115_s29), 7  ;;  %vm302_vm1 = vcmask 64512   ;;  %p1273_p12 = scmp.ne.s32.totalorder %s1507_s26, %s1272_s8 }
  0x15   : > { %1157 = vmatprep.subr.mxu0 %v1350_v0  ;;  %1159 = vmatprep.mubr.msk.f32.mxu0 %vm1351_vm0, %v1350_v0  ;;  %s1442_s30 = sshll.u32 %s1579_s29, 3  ;;  %p1279_p1 = scmp.lt.s32.totalorder %s1507_s26, %s1277_s9 }
  0x16   : > { %1162 = vmatprep.subr.mxu1 %v1350_v0  ;;  %1164 = vmatprep.mubr.msk.f32.mxu1 %vm1351_vm0, %v1350_v0  ;;  %s272_s7 = scalar_lea.vmem %s1565_s1, %s1442_s30  ;;  %s266_s10 = scalar_lea.vmem %s1564_s0, %s1442_s30 }
  0x17   : > { %v294_v1 = vld [vmem:[%s272_s7] sm:$0xff]  ;;  %v295_v2 = vld [vmem:[%s272_s7 + $0x8] sm:$0xff]  ;;  %v296_v5 = vld [vmem:[%s272_s7 + $0x10] sm:$0xff]  ;;  %s278_s13 = scalar_lea.vmem %s1566_s2, %s1442_s30  ;;  %p1274_p13 = pnand %p1273_p12, %p1420_p4 }
  0x18   : > { %1158 = vmatpush3.xpose.msk.msra.mxu0 %vm302_vm1, %v294_v1  ;;  %v290_v3 = vld [vmem:[%s266_s10] sm:$0xff]  ;;  %1163 = vmatpush3.xpose.msk.msra.mxu1 %vm302_vm1, %v295_v2  ;;  %v291_v4 = vld [vmem:[%s266_s10 + $0x8] sm:$0xff]  ;;  %v297_v6 = vld [vmem:[%s272_s7 + $0x18] sm:$0xff]  ;;  %s1511_s7 = scalar_lea.sflag [#allocation3], %s256_s14 }
  0x19   : > { %1167 = vmatprep.subr.mxu0 %v1350_v0  ;;  %1172 = vmatprep.subr.mxu1 %v1350_v0  ;;  %v292_v7 = vld [vmem:[%s266_s10 + $0x10] sm:$0xff]  ;;  %v293_v8 = vld [vmem:[%s266_s10 + $0x18] sm:$0xff]  ;;  %v298_v41 = vld [vmem:[%s278_s13] sm:$0xff]  ;;  %p1275_p0 = pneg %p1274_p13  ;;  %s1278_s10 = scalar_lea.vmem %s1277_s9, 1024 }
  0x1a   : > { %v299_v42 = vld [vmem:[%s278_s13 + $0x8] sm:$0xff]  ;;  %v300_v49 = vld [vmem:[%s278_s13 + $0x10] sm:$0xff]  ;;  %v301_v53 = vld [vmem:[%s278_s13 + $0x18] sm:$0xff]  ;;  %p1280_p2 = scmp.lt.s32.totalorder %s1278_s10, %s1272_s8 }
  0x1b   : > { %1160 = vmatmul.mubr.msk.f32.vlgmr.msra.gmra.mxu0 %vm302_vm1, %v290_v3  ;;  %1165 = vmatmul.mubr.msk.f32.vlgmr.msra.gmra.mxu1 %vm302_vm1, %v291_v4 }
  0x1c   : > { %1168 = vmatpush3.xpose.msk.msra.mxu0 %vm302_vm1, %v296_v5  ;;  %1169 = vmatprep.mubr.msk.f32.mxu0 %vm1351_vm0, %v1350_v0  ;;  %p1281_p3 = por %p1280_p2, %p1279_p1 }
  0x1d   : > { %1173 = vmatpush3.xpose.msk.msra.mxu1 %vm302_vm1, %v297_v6  ;;  %1174 = vmatprep.mubr.msk.f32.mxu1 %vm1351_vm0, %v1350_v0 }
  0x1e   : > { %1177 = vmatprep.subr.mxu0 %v1350_v0  ;;  %1182 = vmatprep.subr.mxu1 %v1350_v0  ;;  %p1282_p5 = pnand %p1281_p3, %p1275_p0 }
  0x1f   : > { %1170 = vmatmul.mubr.msk.f32.vlgmr.msra.gmra.mxu0 %vm302_vm1, %v292_v7 }
  0x20   : > { %1175 = vmatmul.mubr.msk.f32.vlgmr.msra.gmra.mxu1 %vm302_vm1, %v293_v8  ;;  %1179 = vmatprep.mubr.msk.f32.mxu0 %vm1351_vm0, %v1350_v0 }
  0x21   : > { %1184 = vmatprep.mubr.msk.f32.mxu1 %vm1351_vm0, %v1350_v0  ;;  %1178 = vmatpush3.msra.mxu0 %v298_v41 }
  0x22   : > { %1187 = vmatprep.subr.mxu0 %v1350_v0  ;;  %1183 = vmatpush3.msra.mxu1 %v299_v42 }
  0x23   : > { %1192 = vmatprep.subr.mxu1 %v1350_v0 }
  0xdb   : > { %v375_v9 = vpop.f32.mrf.mxu0  ;;  %v451_v10 = vpop.f32.mrf.mxu1 }
  0xdc   : > { %v607_v11 = vsel %vm302_vm1, %v375_v9, -inf  ;;  %v610_v14 = vsel %vm302_vm1, %v451_v10, -inf }
  0xdd   : > { %608 = vmax.xlane.f32.xlu0 %v607_v11  ;;  %v1161_v12 = vpop.f32.mrf.mxu0  ;;  %v1166_v13 = vpop.f32.mrf.mxu1 }
  0xdf   : > { %v527_v15 = vpop.f32.mrf.mxu0 }
  0xe0   : > { %v613_v16 = vsel %vm302_vm1, %v527_v15, -inf  ;;  %v603_v17 = vpop.f32.mrf.mxu1 }
  0xe1   : > { %611 = vmax.xlane.f32.xlu0 %v610_v14  ;;  %614 = vmax.xlane.f32.xlu1 %v613_v16  ;;  %v1171_v18 = vpop.f32.mrf.mxu0  ;;  %v616_v20 = vsel %vm302_vm1, %v603_v17, -inf }
  0xe2   : > { %v1176_v19 = vpop.f32.mrf.mxu1 }
  0xe5   : > { %617 = vmax.xlane.f32.xlu1 %v616_v20 }
 0x166   : > { %v609_v21 = vpop.xlane.xlu0 %608 }
 0x167   : > { %v619_v22 = vsub.f32 %v375_v9, %v609_v21 }
 0x169   : > { %v623_v23 = vmul.f32 1.442695, %v619_v22 }
 0x16a   : > { %v612_v24 = vpop.xlane.xlu0 %611  ;;  %v615_v25 = vpop.xlane.xlu1 %614 }
 0x16b   : > { %1256 = vpow2.f32 %v623_v23  ;;  %v620_v26 = vsub.f32 %v451_v10, %v612_v24  ;;  %v621_v27 = vsub.f32 %v527_v15, %v615_v25 }
 0x16d   : > { %v625_v28 = vmul.f32 1.442695, %v620_v26  ;;  %v627_v29 = vmul.f32 1.442695, %v621_v27 }
 0x16e   : > { %v618_v30 = vpop.xlane.xlu1 %617 }
 0x16f   : > { %1258 = vpow2.f32 %v625_v28  ;;  %v622_v31 = vsub.f32 %v603_v17, %v618_v30 }
 0x170   : > { %1260 = vpow2.f32 %v627_v29 }
 0x171   : > { %v629_v32 = vmul.f32 1.442695, %v622_v31 }
 0x173   : > { %1262 = vpow2.f32 %v629_v32 }
 0x178   : > { %v1257_v33 = vpop.eup %1256 }
 0x179   : > { %v631_v34 = vsel %vm302_vm1, %v1257_v33, 0.0 }
 0x17a   : > { %632 = vadd.xlane.f32.xlu0 %v631_v34 }
 0x17c   : > { %v1259_v35 = vpop.eup %1258 }
 0x17d   : > { %v1261_v36 = vpop.eup %1260  ;;  %v634_v37 = vsel %vm302_vm1, %v1259_v35, 0.0 }
 0x17e   : > { %635 = vadd.xlane.f32.xlu1 %v634_v37  ;;  %v637_v38 = vsel %vm302_vm1, %v1261_v36, 0.0 }
 0x17f   : > { %638 = vadd.xlane.f32.xlu0 %v637_v38 }
 0x180   : > { %v1263_v39 = vpop.eup %1262 }
 0x181   : > { %v640_v40 = vsel %vm302_vm1, %v1263_v39, 0.0 }
 0x182   : > { %641 = vadd.xlane.f32.xlu1 %v640_v40 }
 0x203   : > { %v633_v43 = vpop.xlane.xlu0 %632 }
 0x204   : > { %1264 = vrcp.f32 %v633_v43 }
 0x207   : > { %v636_v44 = vpop.xlane.xlu1 %635 }
 0x208   : > { %v639_v45 = vpop.xlane.xlu0 %638  ;;  %1266 = vrcp.f32 %v636_v44 }
 0x209   : > { %1268 = vrcp.f32 %v639_v45 }
 0x20b   : > { %v642_v46 = vpop.xlane.xlu1 %641 }
 0x20c   : > { %1270 = vrcp.f32 %v642_v46 }
 0x211   : > { %v1265_v47 = vpop.eup %1264 }
 0x212   : > { %v647_v48 = vmul.f32 %v1265_v47, %v1257_v33 }
 0x214   : > { %651 = vst.msk [vmem:[%s258_s22] sm:$0xff] %vm302_vm1, %v647_v48  ;;  %1180 = vmatmul.mubr.msk.f32.vlgmr.msra.gmra.mxu0 %vm302_vm1, %v647_v48 }
 0x215   : > { %v1267_v50 = vpop.eup %1266  ;;  %1188 = vmatpush3.msra.mxu0 %v300_v49  ;;  %1189 = vmatprep.mubr.msk.f32.mxu0 %vm1351_vm0, %v1350_v0 }
 0x216   : > { %v1269_v51 = vpop.eup %1268  ;;  %v648_v52 = vmul.f32 %v1267_v50, %v1259_v35 }
 0x217   : > { %v649_v54 = vmul.f32 %v1269_v51, %v1261_v36 }
 0x218   : > { %652 = vst.msk [vmem:[%s258_s22 + $0x8] sm:$0xff] %vm302_vm1, %v648_v52  ;;  %1185 = vmatmul.mubr.msk.f32.vlgmr.msra.gmra.mxu1 %vm302_vm1, %v648_v52 }
 0x219   : > { %v1271_v55 = vpop.eup %1270  ;;  %653 = vst.msk [vmem:[%s258_s22 + $0x10] sm:$0xff] %vm302_vm1, %v649_v54  ;;  %1190 = vmatmul.mubr.msk.f32.vlgmr.msra.gmra.mxu0 %vm302_vm1, %v649_v54  ;;  %1193 = vmatpush3.msra.mxu1 %v301_v53 }
 0x21a   : > { %1194 = vmatprep.mubr.msk.f32.mxu1 %vm1351_vm0, %v1350_v0  ;;  %v650_v56 = vmul.f32 %v1271_v55, %v1263_v39 }
 0x21c   : > { %654 = vst.msk [vmem:[%s258_s22 + $0x18] sm:$0xff] %vm302_vm1, %v650_v56  ;;  %1195 = vmatmul.mubr.msk.f32.vlgmr.msra.gmra.mxu1 %vm302_vm1, %v650_v56 }
 0x21d   : > { %1285 = shalt.err (!%p1282_p5)
}
 0x21e   : > { %s1286_s11 = scalar_lea.hbm %s1505_s6, 512  ;;  %s1290_s14 = scalar_lea.hbm %s1568_s4, 1024 }
 0x21f   : > { %p1287_p6 = scmp.ne.s32.totalorder %s1505_s6, %s1286_s11  ;;  %p1291_p10 = scmp.lt.s32.totalorder %s1505_s6, %s1568_s4 }
 0x220   : > { %p1292_p11 = scmp.lt.s32.totalorder %s1290_s14, %s1286_s11 }
 0x221   : > { %p1288_p7 = pnand %p1287_p6, %p1420_p4 }
 0x222   : > { %p1293_p12 = por %p1292_p11, %p1291_p10 }
 0x223   : > { %p1289_p9 = pneg %p1288_p7 }
 0x225   : > { %p1294_p13 = pnand %p1293_p12, %p1289_p9 }
 0x227   : > { %1297 = shalt.err (!%p1294_p13)
}
 0x228   : > { %s1353_s24 = smov 128   ;;  %s1354_s29 = smov 8  }
 0x229   : > { %1197 = dma.vmem_to_hbm [thread:$0]  (%p1420_p4), %s1507_s26, 512, %s1505_s6, %s1511_s7, %s1353_s24, %s1353_s24, %s1354_s29  }
 0x22a   : > { %s287_s18 = scalar_lea.vmem %s1567_s3, %s1442_s30 }
 0x2d4   : > { %v724_v57 = vpop.f32.mrf.mxu0 }
 0x2d5   : > { %947 = vst.msk [vmem:[%s287_s18] sm:$0xff] %vm302_vm1, %v724_v57 }
 0x2d6   : > { %v1181_v58 = vpop.f32.mrf.mxu0 }
 0x2d8   : > { %v797_v59 = vpop.f32.mrf.mxu1 }
 0x2d9   : > { %948 = vst.msk [vmem:[%s287_s18 + $0x8] sm:$0xff] %vm302_vm1, %v797_v59  ;;  %v870_v60 = vpop.f32.mrf.mxu0 }
 0x2da   : > { %949 = vst.msk [vmem:[%s287_s18 + $0x10] sm:$0xff] %vm302_vm1, %v870_v60  ;;  %v1186_v61 = vpop.f32.mrf.mxu1 }
 0x2db   : > { %v1191_v62 = vpop.f32.mrf.mxu0 }
 0x2dc   : > { %v943_v63 = vpop.f32.mrf.mxu1 }
 0x2dd   : > { %950 = vst.msk [vmem:[%s287_s18 + $0x18] sm:$0xff] %vm302_vm1, %v943_v63 }
 0x2de   : > { %v1196_v0 = vpop.f32.mrf.mxu1 }
 0x2df PF: > { %p1203_p4 = scmp.ge.s32.totalorder %s1348_s20, 2  ;;  %s1004_s25 = sand.u32 1, %s1328_s15  }
 0x2e0   : > { %s1005_s30 = scalar_lea.sflag [#allocation3], %s1004_s25 }
 0x2e1   : > { %p1200_p0 = pnand %p1203_p4, %p1427_p8 }
 0x2e3   : > { %p1201_p1 = pneg %p1200_p0 }
 0x2e5   : > { %1323 = dma.done.wait (%p1201_p1), %s1005_s30, 512  }
 0x2e6   : > { %1325 = vsyncadd (%p1201_p1), %s1005_s30, 4294966784  ;;  %s18_s20 = sadd.s32 1, %s1348_s20   ;;  %s1571_s15 = smov %s1332_s16 }
 0x2e7   : > { %p15_p2 = scmp.ge.s32.totalorder %s18_s20, 4   ;;  %s1572_s16 = smov %s1336_s17 }
 0x2e8   : > { %s1573_s17 = smov %s1433_s28  ;;  %s1574_s18 = smov %s1344_s19 }
 0x2e9   : > { %s1575_s19 = smov %s1577_s23  ;;  %17 = sbr.rel (!%p15_p2) target bundleno = 4 (0x4), region = 85 }
 0x2ee   :  { %1010 = vsyncpa [#allocation3], 1 }
 0x2ef   :  { %1012 = vsyncpa [#allocation3 + $0x1], 1 }

</bundles_post_ra>
